<compile_context>
chip_gen: v7x
topology: tpu7x:2x2x1
jax: 0.10.0
libtpu: 0.0.40
codegen_flags: <defaults>
</compile_context>

<pallas_src>
import functools
import math

import numpy as np
import jax
import jax.numpy as jnp
from jax import lax
from jax.experimental import pallas as pl
from jax.experimental.pallas import tpu as pltpu


# --------------------------------------------------------------------------
# Pallas kernel: fused conv (per-tap shifted matmuls) + hyper-butterfly mixing
# --------------------------------------------------------------------------
def _hb_fused_kernel(x_ref, w_ref, b_ref, m_ref, a_ref, bu_ref, bd_ref, out_ref,
                     *, c, halves, taps, pad):
    """x_ref  : (Cin, Lin)         bf16  height-padded flattened image (+ lane guards)
       w_ref  : (kh*kw, Cout, Cin) bf16  per-tap conv weights
       b_ref  : (Cout, 1)          f32   conv bias
       m_ref  : (kw, 1, N)         f32   per-dj width-validity masks (virtual width pad)
       a_ref, bu_ref, bd_ref : (L, Cout, 1) f32 butterfly coefficients
       out_ref: (Cout, N)          f32   N = Ho*Wo; channels on sublanes, pixels on lanes
    """
    C, n = out_ref.shape

    # ---- conv: accumulate kh*kw shifted-slice matmuls (bf16 HBM stream, f32 math) ----
    y = None
    for t, (off, dj) in enumerate(taps):
        xt = x_ref[:, pl.ds(off, n)].astype(jnp.float32)           # (Cin, N)
        contrib = jnp.dot(w_ref[t].astype(jnp.float32), xt,
                          preferred_element_type=jnp.float32)      # (Cout, N)
        if dj != pad:                      # zero the row-wraparound edge columns
            contrib = contrib * m_ref[dj]
        y = contrib if y is None else y + contrib
    y = y + b_ref[...]

    sqrt_c = c ** 0.5
    inv_sqrt_c = 1.0 / sqrt_c

    # ---- logmap0 (Poincare ball, curvature c): per-pixel channel norm ----------------
    s = jnp.maximum(jnp.sum(y * y, axis=0, keepdims=True), 1e-12)   # (1, N)
    inv_norm = lax.rsqrt(s)
    norm = s * inv_norm                                   # sqrt(s) without a divide
    z = jnp.minimum(sqrt_c * norm, 1.0 - 1e-5)
    artanh = 0.5 * (jnp.log(1.0 + z) - jnp.log(1.0 - z))  # divide-free artanh
    v = (artanh * inv_norm * inv_sqrt_c) * y

    # ---- L butterfly layers: partner(i)=i^half via two sublane rolls (XLU) -----------
    for l, half in enumerate(halves):
        up = pltpu.roll(v, shift=C - half, axis=0)        # up[i]   = v[(i+half) % C]
        down = pltpu.roll(v, shift=half, axis=0)          # down[i] = v[(i-half) % C]
        v = a_ref[l] * v + bu_ref[l] * up + bd_ref[l] * down

    # ---- expmap0 ----------------------------------------------------------------------
    sv = jnp.maximum(jnp.sum(v * v, axis=0, keepdims=True), 1e-12)
    inv_vn = lax.rsqrt(sv)
    vnorm = sv * inv_vn
    u = (jnp.tanh(sqrt_c * vnorm) * inv_vn * inv_sqrt_c) * v

    # Output stays f32 to preserve module dtype; flip to bf16 if the consumer allows it.
    out_ref[...] = u.astype(out_ref.dtype)


# --------------------------------------------------------------------------
# Parameter plumbing (plain JAX / numpy glue)
# --------------------------------------------------------------------------
def build_butterfly_tables(hb_params, out_ch, L):
    """Per-layer butterfly coefficients in the channels-on-sublanes layout.

    Layer l uses block size bs = 2 * 2^(l % log2(out_ch)); each block holds (a, b)
    applied as  x1' = a*x1 + b*x2 ;  x2' = -b*x1 + a*x2.
    Returns (L, C, 1) f32 tables A / BU / BD plus the static per-layer `half` offsets.
    Power-of-two out_ch is a hard precondition (roll wrap-around rows must be zeroed).
    """
    log2_c = int(math.log2(out_ch))
    assert out_ch == (1 << log2_c), "butterfly mixing requires power-of-two out_ch"
    idx = np.arange(out_ch)
    a_rows, bu_rows, bd_rows, halves = [], [], [], []
    off = 0
    for l in range(L):
        bs = 2 * (1 << (l % log2_c))
        half = bs // 2
        nblk = out_ch // bs
        p = hb_params[off: off + nblk * 2].reshape(nblk, 2)
        off += nblk * 2
        a_vec = jnp.repeat(p[:, 0], bs)                          # (C,)
        b_vec = jnp.repeat(p[:, 1], bs)                          # (C,)
        first = jnp.asarray(((idx % bs) < half).astype(np.float32))
        a_rows.append(a_vec)
        bu_rows.append(b_vec * first)
        bd_rows.append(-b_vec * (1.0 - first))
        halves.append(half)
    A = jnp.stack(a_rows).astype(jnp.float32)[:, :, None]        # (L, C, 1)
    BU = jnp.stack(bu_rows).astype(jnp.float32)[:, :, None]
    BD = jnp.stack(bd_rows).astype(jnp.float32)[:, :, None]
    return A, BU, BD, tuple(halves)


# --------------------------------------------------------------------------
# Public wrapper
# --------------------------------------------------------------------------
def hyper_butterfly_conv2d(x, conv_w, conv_b, hb_params, *, c, L, stride=1, padding=0):
    """x: (B, Cin, H, W) NCHW float32.  Returns (B, Cout, Ho, Wo) NCHW float32."""
    B, Cin, H, W = x.shape
    Cout, _, kh, kw = conv_w.shape
    if not (stride == 1 and kh == kw and 2 * padding == kw - 1):
        raise NotImplementedError(
            "fused Pallas path supports stride=1 'same' convs (2*padding == k-1)")
    Ho, Wo = H, W
    n = Ho * Wo
    max_off = (kh - 1) * W + (kw - 1)
    Lin = n + max_off                          # flattened length incl. lane guards

    # bf16 HBM stream; pad height physically, width padding is virtual (masks below).
    xb = x.astype(jnp.bfloat16)
    xh = jnp.pad(xb, ((0, 0), (0, 0), (padding, padding), (0, 0)))
    xf = xh.reshape(B, Cin, (H + 2 * padding) * W)
    right = Lin - padding - (H + 2 * padding) * W
    assert right >= 0
    xf = jnp.pad(xf, ((0, 0), (0, 0), (padding, right)))          # (B, Cin, Lin)

    # Per-tap weights (tap-major), bias, width-validity masks, butterfly tables.
    wt = jnp.transpose(conv_w, (2, 3, 0, 1)).reshape(kh * kw, Cout, Cin).astype(jnp.bfloat16)
    b2 = conv_b.reshape(Cout, 1).astype(jnp.float32)

    wo_idx = np.tile(np.arange(W), Ho)                            # lane -> output col
    masks = np.stack(
        [((wo_idx + dj - padding >= 0) & (wo_idx + dj - padding < W)).astype(np.float32)
         for dj in range(kw)])[:, None, :]                        # (kw, 1, N)
    masks = jnp.asarray(masks)

    A, BU, BD, halves = build_butterfly_tables(hb_params.astype(jnp.float32), Cout, L)
    taps = tuple((di * W + dj, dj) for di in range(kh) for dj in range(kw))

    kernel = functools.partial(_hb_fused_kernel, c=float(c), halves=halves,
                               taps=taps, pad=padding)
    const = dict(pipeline_mode=pl.Buffered(1))     # grid-invariant -> single-buffer

    # VMEM/step: x block Cin*Lin*2 B (double-buffered) + output Cout*N*4 B + O(KB)
    # constants — microscopic vs. the 32 MiB scoped budget on every generation.
    out = pl.pallas_call(
        kernel,
        out_shape=jax.ShapeDtypeStruct((B, Cout, n), jnp.float32),
        grid_spec=pltpu.PrefetchScalarGridSpec(
            num_scalar_prefetch=0,
            grid=(B,),
            in_specs=[
                pl.BlockSpec((None, Cin, Lin), lambda b: (b, 0, 0)),          # image
                pl.BlockSpec((kh * kw, Cout, Cin), lambda b: (0, 0, 0), **const),
                pl.BlockSpec((Cout, 1), lambda b: (0, 0), **const),           # bias
                pl.BlockSpec((kw, 1, n), lambda b: (0, 0, 0), **const),       # width masks
                pl.BlockSpec((L, Cout, 1), lambda b: (0, 0, 0), **const),     # butterfly a
                pl.BlockSpec((L, Cout, 1), lambda b: (0, 0, 0), **const),     # butterfly +b
                pl.BlockSpec((L, Cout, 1), lambda b: (0, 0, 0), **const),     # butterfly -b
            ],
            out_specs=pl.BlockSpec((None, Cout, n), lambda b: (b, 0, 0)),     # lane-dense
        ),
        compiler_params=pltpu.CompilerParams(
            dimension_semantics=("parallel",),
        ),
    )(xf, wt, b2, masks, A, BU, BD)

    return out.reshape(B, Cout, Ho, Wo)      # free reshape: kernel layout is already NCHW


# --------------------------------------------------------------------------
# Pure-JAX reference (independent formulation: f32 conv + dense permutations)
# --------------------------------------------------------------------------
def reference(x, conv_w, conv_b, hb_params, *, c, L, stride=1, padding=0):
    y = lax.conv_general_dilated(
        x.astype(jnp.float32), conv_w.astype(jnp.float32),
        window_strides=(stride, stride),
        padding=((padding, padding), (padding, padding)),
        dimension_numbers=("NCHW", "OIHW", "NCHW"))
    y = y + conv_b[None, :, None, None]
    B, C, H, W = y.shape
    yr = jnp.transpose(y, (0, 2, 3, 1)).reshape(-1, C)

    sqrt_c = c ** 0.5
    norm = jnp.sqrt(jnp.maximum(jnp.sum(yr * yr, -1, keepdims=True), 1e-12))
    z = jnp.minimum(sqrt_c * norm, 1.0 - 1e-5)
    v = (0.5 * jnp.log((1.0 + z) / (1.0 - z)) / (sqrt_c * norm)) * yr

    log2_c = int(math.log2(C))
    idx = np.arange(C)
    off = 0
    for l in range(L):
        bs = 2 * (1 << (l % log2_c))
        half = bs // 2
        nblk = C // bs
        p = hb_params[off: off + nblk * 2].reshape(nblk, 2)
        off += nblk * 2
        a_vec = jnp.repeat(p[:, 0], bs)
        sign = np.where((idx % bs) < half, 1.0, -1.0).astype(np.float32)
        b_vec = jnp.repeat(p[:, 1], bs) * jnp.asarray(sign)
        P = np.zeros((C, C), np.float32)
        P[idx ^ half, idx] = 1.0
        v = v * a_vec + (v @ jnp.asarray(P)) * b_vec

    vn = jnp.sqrt(jnp.maximum(jnp.sum(v * v, -1, keepdims=True), 1e-12))
    u = (jnp.tanh(sqrt_c * vn) / (sqrt_c * vn)) * v
    return jnp.transpose(u.reshape(B, H, W, C), (0, 3, 1, 2))


# --------------------------------------------------------------------------
if __name__ == "__main__":
    # module config: in_ch=4, out_ch=8, kernel_size=3, stride=1, padding=1, c=1e-3, L=2
    in_ch, out_ch, ksize, stride, padding, c, L = 4, 8, 3, 1, 1, 1e-3, 2

    key = jax.random.PRNGKey(0)
    k_x, k_w, k_b, k_p = jax.random.split(key, 4)

    fan_out = out_ch * ksize * ksize
    fan_in = in_ch * ksize * ksize
    conv_w = jax.random.normal(k_w, (out_ch, in_ch, ksize, ksize), jnp.float32) * math.sqrt(2.0 / fan_out)
    conv_b = jax.random.uniform(k_b, (out_ch,), jnp.float32,
                                -1.0 / math.sqrt(fan_in), 1.0 / math.sqrt(fan_in))
    log2_c = int(math.log2(out_ch))
    total_p = sum(out_ch // (2 * (1 << (l % log2_c))) * 2 for l in range(L))
    hb_params = jax.random.normal(k_p, (total_p,), jnp.float32) * 0.1

    x = jax.random.normal(k_x, (2, in_ch, 16, 16), jnp.float32)   # NCHW

    fwd = jax.jit(functools.partial(hyper_butterfly_conv2d, c=c, L=L,
                                    stride=stride, padding=padding))
    out = jax.block_until_ready(fwd(x, conv_w, conv_b, hb_params))

    ref = reference(x, conv_w, conv_b, hb_params, c=c, L=L, stride=stride, padding=padding)
    assert out.shape == (2, out_ch, 16, 16), out.shape
    # bf16 image/weight streams in the kernel vs. a pure-f32 reference conv -> looser tol.
    np.testing.assert_allclose(np.asarray(out), np.asarray(ref), rtol=2e-2, atol=2e-2)

    print("KERNEL_OK")
</pallas_src>

<mosaic_0001>
module attributes {stable_mosaic.version = 11 : i64} {
  func.func @_hb_fused_kernel(%arg0: i32, %arg1: memref<1x4x290xbf16, #tpu.memory_space<vmem>>, %arg2: memref<9x8x4xbf16, #tpu.memory_space<vmem>>, %arg3: memref<8x1xf32, #tpu.memory_space<vmem>>, %arg4: memref<3x1x256xf32, #tpu.memory_space<vmem>>, %arg5: memref<2x8x1xf32, #tpu.memory_space<vmem>>, %arg6: memref<2x8x1xf32, #tpu.memory_space<vmem>>, %arg7: memref<2x8x1xf32, #tpu.memory_space<vmem>>, %arg8: memref<1x8x256xf32, #tpu.memory_space<vmem>>) attributes {dimension_semantics = [#tpu.dimension_semantics<parallel>], iteration_bounds = array<i64: 2>, scalar_prefetch = 0 : i64, scratch_operands = 0 : i64, tpu.core_type = #tpu.core_type<tc>, window_params = [{transform_indices = @transform_0, window_bounds = array<i64: 1, 4, 290>}, {pipeline_mode = #tpu.pipeline_mode<synchronous>, transform_indices = @transform_1, window_bounds = array<i64: 9, 8, 4>}, {pipeline_mode = #tpu.pipeline_mode<synchronous>, transform_indices = @transform_2, window_bounds = array<i64: 8, 1>}, {pipeline_mode = #tpu.pipeline_mode<synchronous>, transform_indices = @transform_3, window_bounds = array<i64: 3, 1, 256>}, {pipeline_mode = #tpu.pipeline_mode<synchronous>, transform_indices = @transform_4, window_bounds = array<i64: 2, 8, 1>}, {pipeline_mode = #tpu.pipeline_mode<synchronous>, transform_indices = @transform_5, window_bounds = array<i64: 2, 8, 1>}, {pipeline_mode = #tpu.pipeline_mode<synchronous>, transform_indices = @transform_6, window_bounds = array<i64: 2, 8, 1>}, {transform_indices = @transform_7, window_bounds = array<i64: 1, 8, 256>}]} {
    %c0 = arith.constant 0 : index
    %c0_0 = arith.constant 0 : index
    %c0_1 = arith.constant 0 : index
    %0 = vector.load %arg1[%c0, %c0_0, %c0_1] : memref<1x4x290xbf16, #tpu.memory_space<vmem>>, vector<1x4x256xbf16>
    %1 = vector.shape_cast %0 : vector<1x4x256xbf16> to vector<4x256xbf16>
    %2 = arith.extf %1 : vector<4x256xbf16> to vector<4x256xf32>
    %c0_2 = arith.constant 0 : index
    %c0_3 = arith.constant 0 : index
    %c0_4 = arith.constant 0 : index
    %3 = vector.load %arg2[%c0_2, %c0_3, %c0_4] : memref<9x8x4xbf16, #tpu.memory_space<vmem>>, vector<1x8x4xbf16>
    %4 = vector.shape_cast %3 : vector<1x8x4xbf16> to vector<8x4xbf16>
    %5 = arith.extf %4 : vector<8x4xbf16> to vector<8x4xf32>
    %cst = arith.constant dense<0.000000e+00> : vector<8x256xf32>
    %6 = tpu.matmul %5, %2, %cst {dimension_numbers = #tpu.dot_dimension_numbers<[1], [0], [0], [1], [0, 0, 1, 1], [], []>} : vector<8x4xf32>, vector<4x256xf32>, vector<8x256xf32> -> vector<8x256xf32>
    %c0_5 = arith.constant 0 : index
    %c0_6 = arith.constant 0 : index
    %c0_7 = arith.constant 0 : index
    %7 = vector.load %arg4[%c0_5, %c0_6, %c0_7] : memref<3x1x256xf32, #tpu.memory_space<vmem>>, vector<1x1x256xf32>
    %8 = vector.shape_cast %7 : vector<1x1x256xf32> to vector<1x256xf32>
    %9 = vector.broadcast %8 : vector<1x256xf32> to vector<8x256xf32>
    %10 = arith.mulf %6, %9 : vector<8x256xf32>
    %c0_8 = arith.constant 0 : index
    %c0_9 = arith.constant 0 : index
    %c1 = arith.constant 1 : index
    %11 = vector.load %arg1[%c0_8, %c0_9, %c1] : memref<1x4x290xbf16, #tpu.memory_space<vmem>>, vector<1x4x256xbf16>
    %12 = vector.shape_cast %11 : vector<1x4x256xbf16> to vector<4x256xbf16>
    %13 = arith.extf %12 : vector<4x256xbf16> to vector<4x256xf32>
    %c1_10 = arith.constant 1 : index
    %c0_11 = arith.constant 0 : index
    %c0_12 = arith.constant 0 : index
    %14 = vector.load %arg2[%c1_10, %c0_11, %c0_12] : memref<9x8x4xbf16, #tpu.memory_space<vmem>>, vector<1x8x4xbf16>
    %15 = vector.shape_cast %14 : vector<1x8x4xbf16> to vector<8x4xbf16>
    %16 = arith.extf %15 : vector<8x4xbf16> to vector<8x4xf32>
    %cst_13 = arith.constant dense<0.000000e+00> : vector<8x256xf32>
    %17 = tpu.matmul %16, %13, %cst_13 {dimension_numbers = #tpu.dot_dimension_numbers<[1], [0], [0], [1], [0, 0, 1, 1], [], []>} : vector<8x4xf32>, vector<4x256xf32>, vector<8x256xf32> -> vector<8x256xf32>
    %18 = arith.addf %10, %17 : vector<8x256xf32>
    %c0_14 = arith.constant 0 : index
    %c0_15 = arith.constant 0 : index
    %c2 = arith.constant 2 : index
    %19 = vector.load %arg1[%c0_14, %c0_15, %c2] : memref<1x4x290xbf16, #tpu.memory_space<vmem>>, vector<1x4x256xbf16>
    %20 = vector.shape_cast %19 : vector<1x4x256xbf16> to vector<4x256xbf16>
    %21 = arith.extf %20 : vector<4x256xbf16> to vector<4x256xf32>
    %c2_16 = arith.constant 2 : index
    %c0_17 = arith.constant 0 : index
    %c0_18 = arith.constant 0 : index
    %22 = vector.load %arg2[%c2_16, %c0_17, %c0_18] : memref<9x8x4xbf16, #tpu.memory_space<vmem>>, vector<1x8x4xbf16>
    %23 = vector.shape_cast %22 : vector<1x8x4xbf16> to vector<8x4xbf16>
    %24 = arith.extf %23 : vector<8x4xbf16> to vector<8x4xf32>
    %cst_19 = arith.constant dense<0.000000e+00> : vector<8x256xf32>
    %25 = tpu.matmul %24, %21, %cst_19 {dimension_numbers = #tpu.dot_dimension_numbers<[1], [0], [0], [1], [0, 0, 1, 1], [], []>} : vector<8x4xf32>, vector<4x256xf32>, vector<8x256xf32> -> vector<8x256xf32>
    %c2_20 = arith.constant 2 : index
    %c0_21 = arith.constant 0 : index
    %c0_22 = arith.constant 0 : index
    %26 = vector.load %arg4[%c2_20, %c0_21, %c0_22] : memref<3x1x256xf32, #tpu.memory_space<vmem>>, vector<1x1x256xf32>
    %27 = vector.shape_cast %26 : vector<1x1x256xf32> to vector<1x256xf32>
    %28 = vector.broadcast %27 : vector<1x256xf32> to vector<8x256xf32>
    %29 = arith.mulf %25, %28 : vector<8x256xf32>
    %30 = arith.addf %18, %29 : vector<8x256xf32>
    %c0_23 = arith.constant 0 : index
    %c0_24 = arith.constant 0 : index
    %c16 = arith.constant 16 : index
    %31 = vector.load %arg1[%c0_23, %c0_24, %c16] : memref<1x4x290xbf16, #tpu.memory_space<vmem>>, vector<1x4x256xbf16>
    %32 = vector.shape_cast %31 : vector<1x4x256xbf16> to vector<4x256xbf16>
    %33 = arith.extf %32 : vector<4x256xbf16> to vector<4x256xf32>
    %c3 = arith.constant 3 : index
    %c0_25 = arith.constant 0 : index
    %c0_26 = arith.constant 0 : index
    %34 = vector.load %arg2[%c3, %c0_25, %c0_26] : memref<9x8x4xbf16, #tpu.memory_space<vmem>>, vector<1x8x4xbf16>
    %35 = vector.shape_cast %34 : vector<1x8x4xbf16> to vector<8x4xbf16>
    %36 = arith.extf %35 : vector<8x4xbf16> to vector<8x4xf32>
    %cst_27 = arith.constant dense<0.000000e+00> : vector<8x256xf32>
    %37 = tpu.matmul %36, %33, %cst_27 {dimension_numbers = #tpu.dot_dimension_numbers<[1], [0], [0], [1], [0, 0, 1, 1], [], []>} : vector<8x4xf32>, vector<4x256xf32>, vector<8x256xf32> -> vector<8x256xf32>
    %c0_28 = arith.constant 0 : index
    %c0_29 = arith.constant 0 : index
    %c0_30 = arith.constant 0 : index
    %38 = vector.load %arg4[%c0_28, %c0_29, %c0_30] : memref<3x1x256xf32, #tpu.memory_space<vmem>>, vector<1x1x256xf32>
    %39 = vector.shape_cast %38 : vector<1x1x256xf32> to vector<1x256xf32>
    %40 = vector.broadcast %39 : vector<1x256xf32> to vector<8x256xf32>
    %41 = arith.mulf %37, %40 : vector<8x256xf32>
    %42 = arith.addf %30, %41 : vector<8x256xf32>
    %c0_31 = arith.constant 0 : index
    %c0_32 = arith.constant 0 : index
    %c17 = arith.constant 17 : index
    %43 = vector.load %arg1[%c0_31, %c0_32, %c17] : memref<1x4x290xbf16, #tpu.memory_space<vmem>>, vector<1x4x256xbf16>
    %44 = vector.shape_cast %43 : vector<1x4x256xbf16> to vector<4x256xbf16>
    %45 = arith.extf %44 : vector<4x256xbf16> to vector<4x256xf32>
    %c4 = arith.constant 4 : index
    %c0_33 = arith.constant 0 : index
    %c0_34 = arith.constant 0 : index
    %46 = vector.load %arg2[%c4, %c0_33, %c0_34] : memref<9x8x4xbf16, #tpu.memory_space<vmem>>, vector<1x8x4xbf16>
    %47 = vector.shape_cast %46 : vector<1x8x4xbf16> to vector<8x4xbf16>
    %48 = arith.extf %47 : vector<8x4xbf16> to vector<8x4xf32>
    %cst_35 = arith.constant dense<0.000000e+00> : vector<8x256xf32>
    %49 = tpu.matmul %48, %45, %cst_35 {dimension_numbers = #tpu.dot_dimension_numbers<[1], [0], [0], [1], [0, 0, 1, 1], [], []>} : vector<8x4xf32>, vector<4x256xf32>, vector<8x256xf32> -> vector<8x256xf32>
    %50 = arith.addf %42, %49 : vector<8x256xf32>
    %c0_36 = arith.constant 0 : index
    %c0_37 = arith.constant 0 : index
    %c18 = arith.constant 18 : index
    %51 = vector.load %arg1[%c0_36, %c0_37, %c18] : memref<1x4x290xbf16, #tpu.memory_space<vmem>>, vector<1x4x256xbf16>
    %52 = vector.shape_cast %51 : vector<1x4x256xbf16> to vector<4x256xbf16>
    %53 = arith.extf %52 : vector<4x256xbf16> to vector<4x256xf32>
    %c5 = arith.constant 5 : index
    %c0_38 = arith.constant 0 : index
    %c0_39 = arith.constant 0 : index
    %54 = vector.load %arg2[%c5, %c0_38, %c0_39] : memref<9x8x4xbf16, #tpu.memory_space<vmem>>, vector<1x8x4xbf16>
    %55 = vector.shape_cast %54 : vector<1x8x4xbf16> to vector<8x4xbf16>
    %56 = arith.extf %55 : vector<8x4xbf16> to vector<8x4xf32>
    %cst_40 = arith.constant dense<0.000000e+00> : vector<8x256xf32>
    %57 = tpu.matmul %56, %53, %cst_40 {dimension_numbers = #tpu.dot_dimension_numbers<[1], [0], [0], [1], [0, 0, 1, 1], [], []>} : vector<8x4xf32>, vector<4x256xf32>, vector<8x256xf32> -> vector<8x256xf32>
    %c2_41 = arith.constant 2 : index
    %c0_42 = arith.constant 0 : index
    %c0_43 = arith.constant 0 : index
    %58 = vector.load %arg4[%c2_41, %c0_42, %c0_43] : memref<3x1x256xf32, #tpu.memory_space<vmem>>, vector<1x1x256xf32>
    %59 = vector.shape_cast %58 : vector<1x1x256xf32> to vector<1x256xf32>
    %60 = vector.broadcast %59 : vector<1x256xf32> to vector<8x256xf32>
    %61 = arith.mulf %57, %60 : vector<8x256xf32>
    %62 = arith.addf %50, %61 : vector<8x256xf32>
    %c0_44 = arith.constant 0 : index
    %c0_45 = arith.constant 0 : index
    %c32 = arith.constant 32 : index
    %63 = vector.load %arg1[%c0_44, %c0_45, %c32] : memref<1x4x290xbf16, #tpu.memory_space<vmem>>, vector<1x4x256xbf16>
    %64 = vector.shape_cast %63 : vector<1x4x256xbf16> to vector<4x256xbf16>
    %65 = arith.extf %64 : vector<4x256xbf16> to vector<4x256xf32>
    %c6 = arith.constant 6 : index
    %c0_46 = arith.constant 0 : index
    %c0_47 = arith.constant 0 : index
    %66 = vector.load %arg2[%c6, %c0_46, %c0_47] : memref<9x8x4xbf16, #tpu.memory_space<vmem>>, vector<1x8x4xbf16>
    %67 = vector.shape_cast %66 : vector<1x8x4xbf16> to vector<8x4xbf16>
    %68 = arith.extf %67 : vector<8x4xbf16> to vector<8x4xf32>
    %cst_48 = arith.constant dense<0.000000e+00> : vector<8x256xf32>
    %69 = tpu.matmul %68, %65, %cst_48 {dimension_numbers = #tpu.dot_dimension_numbers<[1], [0], [0], [1], [0, 0, 1, 1], [], []>} : vector<8x4xf32>, vector<4x256xf32>, vector<8x256xf32> -> vector<8x256xf32>
    %c0_49 = arith.constant 0 : index
    %c0_50 = arith.constant 0 : index
    %c0_51 = arith.constant 0 : index
    %70 = vector.load %arg4[%c0_49, %c0_50, %c0_51] : memref<3x1x256xf32, #tpu.memory_space<vmem>>, vector<1x1x256xf32>
    %71 = vector.shape_cast %70 : vector<1x1x256xf32> to vector<1x256xf32>
    %72 = vector.broadcast %71 : vector<1x256xf32> to vector<8x256xf32>
    %73 = arith.mulf %69, %72 : vector<8x256xf32>
    %74 = arith.addf %62, %73 : vector<8x256xf32>
    %c0_52 = arith.constant 0 : index
    %c0_53 = arith.constant 0 : index
    %c33 = arith.constant 33 : index
    %75 = vector.load %arg1[%c0_52, %c0_53, %c33] : memref<1x4x290xbf16, #tpu.memory_space<vmem>>, vector<1x4x256xbf16>
    %76 = vector.shape_cast %75 : vector<1x4x256xbf16> to vector<4x256xbf16>
    %77 = arith.extf %76 : vector<4x256xbf16> to vector<4x256xf32>
    %c7 = arith.constant 7 : index
    %c0_54 = arith.constant 0 : index
    %c0_55 = arith.constant 0 : index
    %78 = vector.load %arg2[%c7, %c0_54, %c0_55] : memref<9x8x4xbf16, #tpu.memory_space<vmem>>, vector<1x8x4xbf16>
    %79 = vector.shape_cast %78 : vector<1x8x4xbf16> to vector<8x4xbf16>
    %80 = arith.extf %79 : vector<8x4xbf16> to vector<8x4xf32>
    %cst_56 = arith.constant dense<0.000000e+00> : vector<8x256xf32>
    %81 = tpu.matmul %80, %77, %cst_56 {dimension_numbers = #tpu.dot_dimension_numbers<[1], [0], [0], [1], [0, 0, 1, 1], [], []>} : vector<8x4xf32>, vector<4x256xf32>, vector<8x256xf32> -> vector<8x256xf32>
    %82 = arith.addf %74, %81 : vector<8x256xf32>
    %c0_57 = arith.constant 0 : index
    %c0_58 = arith.constant 0 : index
    %c34 = arith.constant 34 : index
    %83 = vector.load %arg1[%c0_57, %c0_58, %c34] : memref<1x4x290xbf16, #tpu.memory_space<vmem>>, vector<1x4x256xbf16>
    %84 = vector.shape_cast %83 : vector<1x4x256xbf16> to vector<4x256xbf16>
    %85 = arith.extf %84 : vector<4x256xbf16> to vector<4x256xf32>
    %c8 = arith.constant 8 : index
    %c0_59 = arith.constant 0 : index
    %c0_60 = arith.constant 0 : index
    %86 = vector.load %arg2[%c8, %c0_59, %c0_60] : memref<9x8x4xbf16, #tpu.memory_space<vmem>>, vector<1x8x4xbf16>
    %87 = vector.shape_cast %86 : vector<1x8x4xbf16> to vector<8x4xbf16>
    %88 = arith.extf %87 : vector<8x4xbf16> to vector<8x4xf32>
    %cst_61 = arith.constant dense<0.000000e+00> : vector<8x256xf32>
    %89 = tpu.matmul %88, %85, %cst_61 {dimension_numbers = #tpu.dot_dimension_numbers<[1], [0], [0], [1], [0, 0, 1, 1], [], []>} : vector<8x4xf32>, vector<4x256xf32>, vector<8x256xf32> -> vector<8x256xf32>
    %c2_62 = arith.constant 2 : index
    %c0_63 = arith.constant 0 : index
    %c0_64 = arith.constant 0 : index
    %90 = vector.load %arg4[%c2_62, %c0_63, %c0_64] : memref<3x1x256xf32, #tpu.memory_space<vmem>>, vector<1x1x256xf32>
    %91 = vector.shape_cast %90 : vector<1x1x256xf32> to vector<1x256xf32>
    %92 = vector.broadcast %91 : vector<1x256xf32> to vector<8x256xf32>
    %93 = arith.mulf %89, %92 : vector<8x256xf32>
    %94 = arith.addf %82, %93 : vector<8x256xf32>
    %c0_65 = arith.constant 0 : index
    %c0_66 = arith.constant 0 : index
    %95 = vector.load %arg3[%c0_65, %c0_66] : memref<8x1xf32, #tpu.memory_space<vmem>>, vector<8x1xf32>
    %96 = vector.broadcast %95 : vector<8x1xf32> to vector<8x256xf32>
    %97 = arith.addf %94, %96 : vector<8x256xf32>
    %98 = arith.mulf %97, %97 : vector<8x256xf32>
    %cst_67 = arith.constant dense<0.000000e+00> : vector<256xf32>
    %99 = vector.multi_reduction <add>, %98, %cst_67 [0] : vector<8x256xf32> to vector<256xf32>
    %100 = vector.shape_cast %99 : vector<256xf32> to vector<1x256xf32>
    %cst_68 = arith.constant 9.99999996E-13 : f32
    %101 = vector.broadcast %cst_68 : f32 to vector<1x256xf32>
    %102 = arith.maximumf %100, %101 : vector<1x256xf32>
    %103 = math.rsqrt %102 : vector<1x256xf32>
    %104 = arith.mulf %102, %103 : vector<1x256xf32>
    %cst_69 = arith.constant 0.0316227749 : f32
    %105 = vector.broadcast %cst_69 : f32 to vector<1x256xf32>
    %106 = arith.mulf %105, %104 : vector<1x256xf32>
    %cst_70 = arith.constant 0.999989986 : f32
    %107 = vector.broadcast %cst_70 : f32 to vector<1x256xf32>
    %108 = arith.minimumf %106, %107 : vector<1x256xf32>
    %cst_71 = arith.constant 1.000000e+00 : f32
    %109 = vector.broadcast %cst_71 : f32 to vector<1x256xf32>
    %110 = arith.addf %109, %108 : vector<1x256xf32>
    %111 = math.log %110 : vector<1x256xf32>
    %cst_72 = arith.constant 1.000000e+00 : f32
    %112 = vector.broadcast %cst_72 : f32 to vector<1x256xf32>
    %113 = arith.subf %112, %108 : vector<1x256xf32>
    %114 = math.log %113 : vector<1x256xf32>
    %115 = arith.subf %111, %114 : vector<1x256xf32>
    %cst_73 = arith.constant 5.000000e-01 : f32
    %116 = vector.broadcast %cst_73 : f32 to vector<1x256xf32>
    %117 = arith.mulf %116, %115 : vector<1x256xf32>
    %118 = arith.mulf %117, %103 : vector<1x256xf32>
    %cst_74 = arith.constant 31.622776 : f32
    %119 = vector.broadcast %cst_74 : f32 to vector<1x256xf32>
    %120 = arith.mulf %118, %119 : vector<1x256xf32>
    %121 = vector.broadcast %120 : vector<1x256xf32> to vector<8x256xf32>
    %122 = arith.mulf %121, %97 : vector<8x256xf32>
    %c7_i32 = arith.constant 7 : i32
    %123 = tpu.dynamic_rotate %122 by %c7_i32 dim 0 : vector<8x256xf32>, i32 -> vector<8x256xf32>
    %c1_i32 = arith.constant 1 : i32
    %124 = tpu.dynamic_rotate %122 by %c1_i32 dim 0 : vector<8x256xf32>, i32 -> vector<8x256xf32>
    %c0_75 = arith.constant 0 : index
    %c0_76 = arith.constant 0 : index
    %c0_77 = arith.constant 0 : index
    %125 = vector.load %arg5[%c0_75, %c0_76, %c0_77] : memref<2x8x1xf32, #tpu.memory_space<vmem>>, vector<1x8x1xf32>
    %126 = vector.shape_cast %125 : vector<1x8x1xf32> to vector<8x1xf32>
    %127 = vector.broadcast %126 : vector<8x1xf32> to vector<8x256xf32>
    %128 = arith.mulf %127, %122 : vector<8x256xf32>
    %c0_78 = arith.constant 0 : index
    %c0_79 = arith.constant 0 : index
    %c0_80 = arith.constant 0 : index
    %129 = vector.load %arg6[%c0_78, %c0_79, %c0_80] : memref<2x8x1xf32, #tpu.memory_space<vmem>>, vector<1x8x1xf32>
    %130 = vector.shape_cast %129 : vector<1x8x1xf32> to vector<8x1xf32>
    %131 = vector.broadcast %130 : vector<8x1xf32> to vector<8x256xf32>
    %132 = arith.mulf %131, %123 : vector<8x256xf32>
    %133 = arith.addf %128, %132 : vector<8x256xf32>
    %c0_81 = arith.constant 0 : index
    %c0_82 = arith.constant 0 : index
    %c0_83 = arith.constant 0 : index
    %134 = vector.load %arg7[%c0_81, %c0_82, %c0_83] : memref<2x8x1xf32, #tpu.memory_space<vmem>>, vector<1x8x1xf32>
    %135 = vector.shape_cast %134 : vector<1x8x1xf32> to vector<8x1xf32>
    %136 = vector.broadcast %135 : vector<8x1xf32> to vector<8x256xf32>
    %137 = arith.mulf %136, %124 : vector<8x256xf32>
    %138 = arith.addf %133, %137 : vector<8x256xf32>
    %c6_i32 = arith.constant 6 : i32
    %139 = tpu.dynamic_rotate %138 by %c6_i32 dim 0 : vector<8x256xf32>, i32 -> vector<8x256xf32>
    %c2_i32 = arith.constant 2 : i32
    %140 = tpu.dynamic_rotate %138 by %c2_i32 dim 0 : vector<8x256xf32>, i32 -> vector<8x256xf32>
    %c1_84 = arith.constant 1 : index
    %c0_85 = arith.constant 0 : index
    %c0_86 = arith.constant 0 : index
    %141 = vector.load %arg5[%c1_84, %c0_85, %c0_86] : memref<2x8x1xf32, #tpu.memory_space<vmem>>, vector<1x8x1xf32>
    %142 = vector.shape_cast %141 : vector<1x8x1xf32> to vector<8x1xf32>
    %143 = vector.broadcast %142 : vector<8x1xf32> to vector<8x256xf32>
    %144 = arith.mulf %143, %138 : vector<8x256xf32>
    %c1_87 = arith.constant 1 : index
    %c0_88 = arith.constant 0 : index
    %c0_89 = arith.constant 0 : index
    %145 = vector.load %arg6[%c1_87, %c0_88, %c0_89] : memref<2x8x1xf32, #tpu.memory_space<vmem>>, vector<1x8x1xf32>
    %146 = vector.shape_cast %145 : vector<1x8x1xf32> to vector<8x1xf32>
    %147 = vector.broadcast %146 : vector<8x1xf32> to vector<8x256xf32>
    %148 = arith.mulf %147, %139 : vector<8x256xf32>
    %149 = arith.addf %144, %148 : vector<8x256xf32>
    %c1_90 = arith.constant 1 : index
    %c0_91 = arith.constant 0 : index
    %c0_92 = arith.constant 0 : index
    %150 = vector.load %arg7[%c1_90, %c0_91, %c0_92] : memref<2x8x1xf32, #tpu.memory_space<vmem>>, vector<1x8x1xf32>
    %151 = vector.shape_cast %150 : vector<1x8x1xf32> to vector<8x1xf32>
    %152 = vector.broadcast %151 : vector<8x1xf32> to vector<8x256xf32>
    %153 = arith.mulf %152, %140 : vector<8x256xf32>
    %154 = arith.addf %149, %153 : vector<8x256xf32>
    %155 = arith.mulf %154, %154 : vector<8x256xf32>
    %cst_93 = arith.constant dense<0.000000e+00> : vector<256xf32>
    %156 = vector.multi_reduction <add>, %155, %cst_93 [0] : vector<8x256xf32> to vector<256xf32>
    %157 = vector.shape_cast %156 : vector<256xf32> to vector<1x256xf32>
    %cst_94 = arith.constant 9.99999996E-13 : f32
    %158 = vector.broadcast %cst_94 : f32 to vector<1x256xf32>
    %159 = arith.maximumf %157, %158 : vector<1x256xf32>
    %160 = math.rsqrt %159 : vector<1x256xf32>
    %161 = arith.mulf %159, %160 : vector<1x256xf32>
    %cst_95 = arith.constant 0.0316227749 : f32
    %162 = vector.broadcast %cst_95 : f32 to vector<1x256xf32>
    %163 = arith.mulf %162, %161 : vector<1x256xf32>
    %164 = math.tanh %163 : vector<1x256xf32>
    %165 = arith.mulf %164, %160 : vector<1x256xf32>
    %cst_96 = arith.constant 31.622776 : f32
    %166 = vector.broadcast %cst_96 : f32 to vector<1x256xf32>
    %167 = arith.mulf %165, %166 : vector<1x256xf32>
    %168 = vector.broadcast %167 : vector<1x256xf32> to vector<8x256xf32>
    %169 = arith.mulf %168, %154 : vector<8x256xf32>
    %c0_97 = arith.constant 0 : index
    %c0_98 = arith.constant 0 : index
    %c0_99 = arith.constant 0 : index
    %170 = vector.load %arg8[%c0_97, %c0_98, %c0_99] : memref<1x8x256xf32, #tpu.memory_space<vmem>>, vector<1x8x256xf32>
    %171 = vector.shape_cast %170 : vector<1x8x256xf32> to vector<8x256xf32>
    %172 = vector.shape_cast %169 : vector<8x256xf32> to vector<1x8x256xf32>
    tpu.vector_store %arg8[%c0_97, %c0_98, %c0_99], %172 {strides = array<i32>} : memref<1x8x256xf32, #tpu.memory_space<vmem>>, vector<1x8x256xf32>,
    return
  }
  func.func @transform_0(%arg0: i32) -> (i32, i32, i32) {
    %c0_i32 = arith.constant 0 : i32
    %c0_i32_0 = arith.constant 0 : i32
    %c0_i32_1 = arith.constant 0 : i32
    return %arg0, %c0_i32, %c0_i32_0 : i32, i32, i32
  }
  func.func @transform_1(%arg0: i32) -> (i32, i32, i32) {
    %c0_i32 = arith.constant 0 : i32
    %c0_i32_0 = arith.constant 0 : i32
    %c0_i32_1 = arith.constant 0 : i32
    %c0_i32_2 = arith.constant 0 : i32
    return %c0_i32, %c0_i32_0, %c0_i32_1 : i32, i32, i32
  }
  func.func @transform_2(%arg0: i32) -> (i32, i32) {
    %c0_i32 = arith.constant 0 : i32
    %c0_i32_0 = arith.constant 0 : i32
    %c0_i32_1 = arith.constant 0 : i32
    return %c0_i32, %c0_i32_0 : i32, i32
  }
  func.func @transform_3(%arg0: i32) -> (i32, i32, i32) {
    %c0_i32 = arith.constant 0 : i32
    %c0_i32_0 = arith.constant 0 : i32
    %c0_i32_1 = arith.constant 0 : i32
    %c0_i32_2 = arith.constant 0 : i32
    return %c0_i32, %c0_i32_0, %c0_i32_1 : i32, i32, i32
  }
  func.func @transform_4(%arg0: i32) -> (i32, i32, i32) {
    %c0_i32 = arith.constant 0 : i32
    %c0_i32_0 = arith.constant 0 : i32
    %c0_i32_1 = arith.constant 0 : i32
    %c0_i32_2 = arith.constant 0 : i32
    return %c0_i32, %c0_i32_0, %c0_i32_1 : i32, i32, i32
  }
  func.func @transform_5(%arg0: i32) -> (i32, i32, i32) {
    %c0_i32 = arith.constant 0 : i32
    %c0_i32_0 = arith.constant 0 : i32
    %c0_i32_1 = arith.constant 0 : i32
    %c0_i32_2 = arith.constant 0 : i32
    return %c0_i32, %c0_i32_0, %c0_i32_1 : i32, i32, i32
  }
  func.func @transform_6(%arg0: i32) -> (i32, i32, i32) {
    %c0_i32 = arith.constant 0 : i32
    %c0_i32_0 = arith.constant 0 : i32
    %c0_i32_1 = arith.constant 0 : i32
    %c0_i32_2 = arith.constant 0 : i32
    return %c0_i32, %c0_i32_0, %c0_i32_1 : i32, i32, i32
  }
  func.func @transform_7(%arg0: i32) -> (i32, i32, i32) {
    %c0_i32 = arith.constant 0 : i32
    %c0_i32_0 = arith.constant 0 : i32
    %c0_i32_1 = arith.constant 0 : i32
    return %arg0, %c0_i32, %c0_i32_0 : i32, i32, i32
  }
}

</mosaic_0001>

<bundles_post_ra>
// kernel: neg.18
= control target key start
LH: loop header
LB: loop body
LE: loop exit
PB: predicated region body
PF: predicated region fallthrough
CT: control target
= control target key end

     0   :  { %s24_s0 = inlined_call_operand.vmem [shape: f32[4], index: 0, kind: input, shape index: {}]   ;;  %s25_s1 = inlined_call_operand.vmem [shape: f32[4], index: 1, kind: output, shape index: {}]  }
   0x1   :  { %v2_v0 = vld [vmem:[%s24_s0] sm:$0x1] }
   0x2   :  { %v5_v1 = vxor.u32 2147483648, %v2_v0 }
   0x4   :  { %7 = vst [vmem:[%s25_s1] sm:$0x1] %v5_v1 }

// kernel: neg.19
= control target key start
LH: loop header
LB: loop body
LE: loop exit
PB: predicated region body
PF: predicated region fallthrough
CT: control target
= control target key end

     0   :  { %s24_s0 = inlined_call_operand.vmem [shape: f32[2], index: 0, kind: input, shape index: {}]   ;;  %s25_s1 = inlined_call_operand.vmem [shape: f32[2], index: 1, kind: output, shape index: {}]  }
   0x1   :  { %v2_v0 = vld [vmem:[%s24_s0] sm:$0x1] }
   0x2   :  { %v5_v1 = vxor.u32 2147483648, %v2_v0 }
   0x4   :  { %7 = vst [vmem:[%s25_s1] sm:$0x1] %v5_v1 }

// kernel: hyper_butterfly_conv2d.1
= control target key start
LH: loop header
LB: loop body
LE: loop exit
PB: predicated region body
PF: predicated region fallthrough
CT: control target
= control target key end

     0   :  { %s1597_s24 = smov 0   ;;  %s1721_s0 = inlined_call_operand.vmem [shape: bf16[2,4,290], index: 0, kind: input, shape index: {}]   ;;  %s1722_s1 = inlined_call_operand.vmem [shape: bf16[9,8,4], index: 1, kind: input, shape index: {}]   ;;  %s1723_s2 = inlined_call_operand.vmem [shape: f32[8,1], index: 2, kind: input, shape index: {}]   ;;  %s1724_s3 = inlined_call_operand.vmem [shape: f32[3,1,256], index: 3, kind: input, shape index: {}]   ;;  %s1725_s4 = inlined_call_operand.vmem [shape: f32[2,8,1], index: 4, kind: input, shape index: {}]   ;;  %s1726_s5 = inlined_call_operand.vmem [shape: f32[2,8,1], index: 5, kind: input, shape index: {}]   ;;  %s1727_s6 = inlined_call_operand.vmem [shape: f32[2,8,1], index: 6, kind: input, shape index: {}]   ;;  %s1728_s7 = inlined_call_operand.vmem [shape: f32[2,8,256], index: 7, kind: output, shape index: {}]  }
   0x1 LB: > { %s1394_s25 = sadd.s32 4294967295, %s1545_s24   ;;  %p1398_p0 = scmp.ge.s32.totalorder %s1545_s24, 1  ;;  %s1545_s24 = sphi %s1597_s24, %s17_s24  }
   0x2   : > { %p237_p1 = scmp.lt.s32.totalorder %s1545_s24, 3 }
   0x4   : > { %p238_p2 = pnand %p1398_p0, %p237_p1 }
   0x5   : > { %p269_p3 = scmp.lt.s32.totalorder (!%p238_p2), %s1394_s25, 1  ;;  %v1547_v0 = vmov (!%p238_p2), 0.0   ;;  %s1548_s30 = smov (!%p238_p2), 112   ;;  %v1625_v22 = vld [vmem:[%s1722_s1] sm:$0xff] (!%p238_p2)   ;;  %vm289_vm0 = vcmask (!%p238_p2), 1043456   ;;  %vm285_vm1 = vcmask (!%p238_p2), 31744  }
   0x6   : > { %241 = sbr.rel (%p238_p2) target bundleno = 511 (0x1ff), region = 48  ;;  %358 = vmatprep.mubr.f32.mxu0 (!%p238_p2), %v1547_v0  ;;  %468 = vmatprep.mubr.f32.mxu1 (!%p238_p2), %v1547_v0  ;;  %s1549_s8 = smov (!%p238_p2), 127   ;;  %v282_v29 = vunpack.c.l.bf16 (!%p238_p2), %v1625_v22  ;;  %v1553_v44 = vmov (!%p238_p2), 0   ;;  %v1186_v47 = vld [vmem:[%s1723_s2] sm:$0xff] (!%p238_p2)  ;;  %v1439_v51 = vld [vmem:[%s1726_s5 + $0x8] sm:$0xff] (!%p238_p2)  ;;  %vm492_vm2 = vcmask (!%p238_p2), 1031168  }
   0x7   : > { %s1550_s9 = smov (!%p238_p2), 126   ;;  %s1551_s12 = smov (!%p238_p2), 111   ;;  %1517 = vset.pattern.permute.xlu0 (!%p238_p2), %v1553_v44  ;;  %1518 = vset.pattern.permute.xlu1 (!%p238_p2), %v1553_v44  ;;  %v1244_v48 = vld [vmem:[%s1725_s4] sm:$0xff] (!%p238_p2)  ;;  %v1438_v52 = vld [vmem:[%s1725_s4 + $0x8] sm:$0xff] (!%p238_p2)  ;;  %vm394_vm3 = vcmask (!%p238_p2), 1039360   ;;  %vm605_vm4 = vcmask (!%p238_p2), 916480  }
   0x8   : > { %s1552_s13 = smov (!%p238_p2), 110   ;;  %s1554_s14 = smov (!%p238_p2), 96   ;;  %v1262_v49 = vld [vmem:[%s1727_s6] sm:$0xff] (!%p238_p2)  ;;  %v1440_v53 = vld [vmem:[%s1727_s6 + $0x8] sm:$0xff] (!%p238_p2)  ;;  %vm705_vm5 = vcmask (!%p238_p2), 908288   ;;  %vm803_vm6 = vcmask (!%p238_p2), 900096  }
   0x9   : > { %s1555_s15 = smov (!%p238_p2), 95   ;;  %s1556_s16 = smov (!%p238_p2), 94   ;;  %v1252_v50 = vld [vmem:[%s1726_s5] sm:$0xff] (!%p238_p2)  ;;  %v1409_v57 = vld [vmem:[%s1722_s1 + $0x8] sm:$0xf] (!%p238_p2)  ;;  %vm903_vm7 = vcmask (!%p238_p2), 785408  }
   0xa   : > { %v482_v61 = vunpack.c.l.bf16 (!%p238_p2), %v1409_v57  ;;  %vm1003_vm8 = vcmask (!%p238_p2), 777216   ;;  %vm1101_vm9 = vcmask (!%p238_p2), 769024   ;;  %v1413_v57 = vld [vmem:[%s1724_s3 + $0x4] sm:$0x3] (!%p238_p2) }
   0xd   : > { %s1730_s25 = smov (!%p269_p3, %s1394_s25), 1 }
   0xe   : > { %s1458_s26 = smul.u32 6, %s1730_s25  ;;  %s1443_s22 = sshll.u32 %s1730_s25, 4 }
   0xf   : > { %s278_s27 = scalar_lea.vmem %s1728_s7, %s1443_s22 }
  0x10   : > { %s1613_s29 = scalar_lea.vmem %s1721_s0, %s1458_s26 }
  0x11   : > { %v590_v1 = vld [vmem:[%s1613_s29] sm:$0x3f] }
  0x12   : > { %v379_v2 = vld [vmem:[%s1613_s29] sm:$0x3f]  ;;  %v591_v4 = vunpack.c.l.bf16 %v590_v1  ;;  %v592_v13 = vunpack.c.h.bf16 %v590_v1 }
  0x13   : > { %v477_v3 = vld [vmem:[%s1613_s29] sm:$0x3f]  ;;  %v380_v5 = vunpack.c.l.bf16 %v379_v2  ;;  %v381_v10 = vunpack.c.h.bf16 %v379_v2 }
  0x14   : > { %v788_v6 = vld [vmem:[%s1613_s29] sm:$0x3f]  ;;  %v478_v8 = vunpack.c.l.bf16 %v477_v3  ;;  %v479_v9 = vunpack.c.h.bf16 %v477_v3  ;;  %599 = vrot.lane.b32.xlu1 %v591_v4, %s1548_s30  ;;  %v598_v14 = vcombine.high %v591_v4, %v591_v4 }
  0x15   : > { %v690_v7 = vld [vmem:[%s1613_s29] sm:$0x3f]  ;;  %388 = vrot.lane.b32.xlu0 %v380_v5, %s1549_s8  ;;  %v387_v11 = vcombine.high %v380_v5, %v380_v5  ;;  %v789_v16 = vunpack.c.l.bf16 %v788_v6  ;;  %v790_v24 = vunpack.c.h.bf16 %v788_v6 }
  0x16   : > { %v691_v12 = vunpack.c.l.bf16 %v690_v7  ;;  %v485_v15 = vcombine.high %v478_v8, %v478_v8  ;;  %v279_v17 = vld [vmem:[%s1613_s29] sm:$0xf]  ;;  %v692_v20 = vunpack.c.h.bf16 %v690_v7  ;;  %v1487_v23 = vpack.i.bf16 %v592_v13, %v598_v14 }
  0x17   : > { %v1477_v19 = vpack.i.bf16 %v381_v10, %v387_v11  ;;  %v796_v25 = vcombine.high %v789_v16, %v789_v16  ;;  %v888_v26 = vld [vmem:[%s1613_s29] sm:$0x3f]  ;;  %v280_v27 = vunpack.c.l.bf16 %v279_v17  ;;  %v384_v7 = vunpack.c.h.bf16 %v1625_v22  ;;  %v1414_v10 = vld [vmem:[%s1722_s1 + $0xc] sm:$0xff]  }
  0x18   : > { %v1482_v18 = vpack.i.bf16 %v479_v9, %v485_v15  ;;  %v698_v21 = vcombine.high %v691_v12, %v691_v12  ;;  %v889_v31 = vunpack.c.l.bf16 %v888_v26  ;;  %v988_v33 = vld [vmem:[%s1613_s29] sm:$0x3f]  ;;  %v890_v35 = vunpack.c.h.bf16 %v888_v26 }
  0x19   : > { %486 = vrot.lane.b32.xlu0 %v478_v8, %s1550_s9  ;;  %v284_v28 = vcombine.high %v280_v27, %v280_v27  ;;  %v1497_v32 = vpack.i.bf16 %v790_v24, %v796_v25  ;;  %v1086_v34 = vld [vmem:[%s1613_s29] sm:$0x3f]  ;;  %v989_v37 = vunpack.c.l.bf16 %v988_v33  ;;  %v990_v40 = vunpack.c.h.bf16 %v988_v33 }
  0x1a   : > { %1483 = vrot.lane.b32.xlu1 %v1482_v18, %s1550_s9  ;;  %v1492_v30 = vpack.i.bf16 %v692_v20, %v698_v21  ;;  %v896_v36 = vcombine.high %v889_v31, %v889_v31  ;;  %v1087_v38 = vunpack.c.l.bf16 %v1086_v34  ;;  %v1088_v42 = vunpack.c.h.bf16 %v1086_v34 }
  0x1b   : > { %1402 = vmatprep.subr.msk.mxu0 %vm289_vm0, %v284_v28  ;;  %v996_v41 = vcombine.high %v989_v37, %v989_v37  ;;  %v595_v20 = vunpack.c.l.bf16 %v1414_v10  ;;  %v695_v28 = vunpack.c.h.bf16 %v1414_v10 }
  0x1c   : > { %1403 = vmatpush1.msk.msra.mxu0 %vm289_vm0, %v280_v27  ;;  %v1502_v39 = vpack.i.bf16 %v890_v35, %v896_v36  ;;  %v1094_v43 = vcombine.high %v1087_v38, %v1087_v38 }
  0x1d   : > { %1478 = vrot.lane.b32.xlu0 %v1477_v19, %s1549_s8  ;;  %1404 = vmatmul.mubr.msk.f32.vlgmr.msra.gmra.mrb[0].mxu0 %vm285_vm1, %v282_v29  ;;  %v1507_v45 = vpack.i.bf16 %v990_v40, %v996_v41 }
  0x1e   : > { %1488 = vrot.lane.b32.xlu1 %v1487_v23, %s1548_s30  ;;  %566 = vmatprep.mubr.f32.mxu0 %v1547_v0  ;;  %v1512_v46 = vpack.i.bf16 %v1088_v42, %v1094_v43 }
  0x21   : > { %1493 = vrot.lane.b32.xlu0 %v1492_v30, %s1551_s12 }
  0x22   : > { %1498 = vrot.lane.b32.xlu1 %v1497_v32, %s1552_s13 }
  0x25   : > { %699 = vrot.lane.b32.xlu0 %v691_v12, %s1551_s12 }
  0x26   : > { %797 = vrot.lane.b32.xlu1 %v789_v16, %s1552_s13  ;;  %v1422_v16 = vld [vmem:[%s1722_s1 + $0x14] sm:$0xff]  }
  0x27   : > { %v793_v24 = vunpack.c.l.bf16 %v1422_v16  ;;  %v893_v33 = vunpack.c.h.bf16 %v1422_v16 }
  0x29   : > { %1503 = vrot.lane.b32.xlu0 %v1502_v39, %s1554_s14 }
  0x2a   : > { %897 = vrot.lane.b32.xlu1 %v889_v31, %s1554_s14 }
  0x2d   : > { %1508 = vrot.lane.b32.xlu0 %v1507_v45, %s1555_s15 }
  0x2e   : > { %1513 = vrot.lane.b32.xlu1 %v1512_v46, %s1556_s16 }
  0x31   : > { %997 = vrot.lane.b32.xlu0 %v989_v37, %s1555_s15  ;;  %v1430_v37 = vld [vmem:[%s1722_s1 + $0x1c] sm:$0xff]  }
  0x32   : > { %1095 = vrot.lane.b32.xlu1 %v1087_v38, %s1556_s16  ;;  %v993_v44 = vunpack.c.l.bf16 %v1430_v37 }
  0x35   : > { %1189 = vperm.xlu0 %1517, %v1186_v47   ;;  %v1091_v47 = vunpack.c.h.bf16 %v1430_v37 }
  0x36   : > { %1247 = vperm.xlu1 %1518, %v1244_v48  }
  0x39   : > { %1265 = vperm.xlu0 %1517, %v1262_v49  }
  0x3a   : > { %1255 = vperm.xlu1 %1518, %v1252_v50  }
  0x3d   : > { %1289 = vperm.xlu0 %1517, %v1439_v51  }
  0x3e   : > { %1280 = vperm.xlu1 %1518, %v1438_v52   ;;  %v367_v52 = vlaneseq }
  0x42   : > { %1300 = vperm.xlu1 %1518, %v1440_v53   ;;  %v368_v53 = vshrl.u32 %v367_v52, 7 }
  0x86   : > { %v600_v54 = vpop.permute.xlu1 %599 }
  0x87   : > { %v389_v55 = vpop.permute.xlu0 %388 }
  0x8b   : > { %v487_v56 = vpop.permute.xlu0 %486 }
  0x8c   : > { %v1484_v58 = vpop.permute.xlu1 %1483 }
  0x8d   : > { %v1486_v59 = vunpack.i.h.bf16 %v1484_v58  ;;  %v1485_v60 = vunpack.i.l.bf16 %v1484_v58 }
  0x8f   : > { %v493_v62 = vsel %vm492_vm2, %v487_v56, %v1485_v60  ;;  %v1479_v63 = vpop.permute.xlu0 %1478  ;;  %v494_v1 = vsel %vm492_vm2, %v1485_v60, %v1486_v59  ;;  %v373_v56 = vsub.s32 1, %v368_v53 }
  0x90   : > { %v1489_v2 = vpop.permute.xlu1 %1488  ;;  %v1481_v3 = vunpack.i.h.bf16 %v1479_v63  ;;  %v1480_v4 = vunpack.i.l.bf16 %v1479_v63  ;;  %1410 = vmatprep.subr.msk.mxu0 %vm289_vm0, %v494_v1 }
  0x91   : > { %v1491_v5 = vunpack.i.h.bf16 %v1489_v2  ;;  %v1490_v6 = vunpack.i.l.bf16 %v1489_v2  ;;  %1411 = vmatpush1.msk.msra.mxu0 %vm289_vm0, %v493_v62 }
  0x92   : > { %v396_v8 = vsel %vm394_vm3, %v1480_v4, %v1481_v3  ;;  %v395_v9 = vsel %vm394_vm3, %v389_v55, %v1480_v4  ;;  %1412 = vmatmul.mubr.msk.f32.vlgmr.msra.gmra.mrb[2].mxu0 %vm285_vm1, %v482_v61  ;;  %v365_v55 = vld [vmem:[%s1724_s3] sm:$0x3]  ;;  %v583_v61 = vrot.slane %v1413_v57, %v373_v56 }
  0x93   : > { %v1494_v11 = vpop.permute.xlu0 %1493  ;;  %1406 = vmatprep.subr.msk.mxu1 %vm289_vm0, %v396_v8  ;;  %877 = vmatprep.mubr.f32.mxu0 %v1547_v0  ;;  %v607_v15 = vsel %vm605_vm4, %v1490_v6, %v1491_v5  ;;  %v606_v19 = vsel %vm605_vm4, %v600_v54, %v1490_v6  ;;  %v369_v54 = vsub.s32 0, %v368_v53  ;;  %v374_v59 = vrot.slane %v365_v55, %v373_v56 }
  0x94   : > { %v1499_v12 = vpop.permute.xlu1 %1498  ;;  %v1496_v13 = vunpack.i.h.bf16 %v1494_v11  ;;  %v1495_v14 = vunpack.i.l.bf16 %v1494_v11  ;;  %1407 = vmatpush1.msk.msra.mxu1 %vm289_vm0, %v395_v9 }
  0x95   : > { %v1501_v17 = vunpack.i.h.bf16 %v1499_v12  ;;  %v1500_v18 = vunpack.i.l.bf16 %v1499_v12  ;;  %1408 = vmatmul.mubr.msk.f32.vlgmr.msra.gmra.mrb[0].mxu1 %vm285_vm1, %v384_v7  ;;  %1415 = vmatprep.subr.msk.mxu1 %vm289_vm0, %v607_v15  ;;  %v370_v58 = vrot.slane %v365_v55, %v369_v54  ;;  %v579_v60 = vrot.slane %v1413_v57, %v369_v54 }
  0x96   : > { %1416 = vmatpush1.msk.msra.mxu1 %vm289_vm0, %v606_v19  ;;  %v707_v21 = vsel %vm705_vm5, %v1495_v14, %v1496_v13  ;;  %679 = vmatprep.mubr.f32.mxu1 %v1547_v0 }
  0x97   : > { %v700_v22 = vpop.permute.xlu0 %699  ;;  %1419 = vmatprep.subr.msk.mxu1 %vm289_vm0, %v707_v21  ;;  %v805_v23 = vsel %vm803_vm6, %v1500_v18, %v1501_v17 }
  0x98   : > { %v798_v25 = vpop.permute.xlu1 %797  ;;  %v706_v26 = vsel %vm705_vm5, %v700_v22, %v1495_v14  ;;  %1423 = vmatprep.subr.msk.mxu0 %vm289_vm0, %v805_v23 }
  0x99   : > { %v804_v27 = vsel %vm803_vm6, %v798_v25, %v1500_v18  ;;  %1417 = vmatmul.mubr.msk.f32.vlgmr.msra.gmra.mrb[2].mxu1 %vm285_vm1, %v595_v20 }
  0x9a   : > { %1420 = vmatpush1.msk.msra.mxu1 %vm289_vm0, %v706_v26  ;;  %1424 = vmatpush1.msk.msra.mxu0 %vm289_vm0, %v804_v27 }
  0x9b   : > { %v1504_v29 = vpop.permute.xlu0 %1503  ;;  %779 = vmatprep.mubr.f32.mxu1 %v1547_v0  ;;  %1425 = vmatmul.mubr.msk.f32.vlgmr.msra.gmra.mrb[4].mxu0 %vm285_vm1, %v793_v24 }
  0x9c   : > { %v898_v30 = vpop.permute.xlu1 %897  ;;  %v1506_v31 = vunpack.i.h.bf16 %v1504_v29  ;;  %v1505_v32 = vunpack.i.l.bf16 %v1504_v29  ;;  %977 = vmatprep.mubr.f32.mxu0 %v1547_v0 }
  0x9d   : > { %1421 = vmatmul.mubr.msk.f32.vlgmr.msra.gmra.mrb[0].mxu1 %vm285_vm1, %v695_v28 }
  0x9e   : > { %v905_v34 = vsel %vm903_vm7, %v1505_v32, %v1506_v31  ;;  %v904_v35 = vsel %vm903_vm7, %v898_v30, %v1505_v32  ;;  %1077 = vmatprep.mubr.f32.mxu1 %v1547_v0 }
  0x9f   : > { %v1509_v36 = vpop.permute.xlu0 %1508  ;;  %1427 = vmatprep.subr.msk.mxu0 %vm289_vm0, %v905_v34 }
  0xa0   : > { %v1514_v38 = vpop.permute.xlu1 %1513  ;;  %v1511_v39 = vunpack.i.h.bf16 %v1509_v36  ;;  %v1510_v40 = vunpack.i.l.bf16 %v1509_v36  ;;  %1428 = vmatpush1.msk.msra.mxu0 %vm289_vm0, %v904_v35 }
  0xa1   : > { %v1516_v41 = vunpack.i.h.bf16 %v1514_v38  ;;  %v1515_v42 = vunpack.i.l.bf16 %v1514_v38  ;;  %1429 = vmatmul.mubr.msk.f32.vlgmr.msra.gmra.mrb[6].mxu0 %vm285_vm1, %v893_v33 }
  0xa2   : > { %v1005_v43 = vsel %vm1003_vm8, %v1510_v40, %v1511_v39  ;;  %1175 = vmatprep.mubr.f32.mxu0 %v1547_v0 }
  0xa3   : > { %v998_v45 = vpop.permute.xlu0 %997  ;;  %1431 = vmatprep.subr.msk.mxu1 %vm289_vm0, %v1005_v43  ;;  %v1103_v46 = vsel %vm1101_vm9, %v1515_v42, %v1516_v41 }
  0xa4   : > { %v1096_v48 = vpop.permute.xlu1 %1095  ;;  %v1004_v49 = vsel %vm1003_vm8, %v998_v45, %v1510_v40  ;;  %1435 = vmatprep.subr.msk.mxu0 %vm289_vm0, %v1103_v46 }
  0xa5   : > { %v1102_v50 = vsel %vm1101_vm9, %v1096_v48, %v1515_v42  ;;  %1432 = vmatpush1.msk.msra.mxu1 %vm289_vm0, %v1004_v49 }
  0xa6   : > { %1436 = vmatpush1.msk.msra.mxu0 %vm289_vm0, %v1102_v50  ;;  %1433 = vmatmul.mubr.msk.f32.vlgmr.msra.gmra.mrb[0].mxu1 %vm285_vm1, %v993_v44 }
  0xa7   : > { %1437 = vmatmul.mubr.msk.f32.vlgmr.msra.gmra.mrb[8].mxu0 %vm285_vm1, %v1091_v47 }
  0xb4   : > { %v1190_v35 = vpop.permute.xlu0 %1189 }
  0xf0   : > { %v360_v0 = vpop.f32.mrb[0].mxu0 }
  0xf1   : > { %v362_v51 = vpop.f32.mrb[1].mxu0  ;;  %v377_v62 = vmul.f32 %v370_v58, %v360_v0 }
  0xf2   : > { %v378_v63 = vmul.f32 %v374_v59, %v362_v51 }
 0x165   : > { %v568_v1 = vpop.f32.mrb[2].mxu0 }
 0x166   : > { %v586_v2 = vmul.f32 %v579_v60, %v568_v1  ;;  %v570_v3 = vpop.f32.mrb[3].mxu0 }
 0x167   : > { %v587_v4 = vmul.f32 %v583_v61, %v570_v3 }
 0x168   : > { %v1444_v5 = vadd.f32 %v586_v2, %v377_v62 }
 0x169   : > { %v1449_v6 = vadd.f32 %v587_v4, %v378_v63 }
 0x16c   : > { %v681_v7 = vpop.f32.mrb[2].mxu1 }
 0x16d   : > { %v686_v8 = vmul.f32 %v681_v7, %v370_v58  ;;  %v683_v9 = vpop.f32.mrb[3].mxu1 }
 0x16e   : > { %v687_v10 = vmul.f32 %v683_v9, %v374_v59  ;;  %v879_v11 = vpop.f32.mrb[4].mxu0 }
 0x16f   : > { %v1445_v12 = vadd.f32 %v1444_v5, %v686_v8  ;;  %v884_v13 = vmul.f32 %v879_v11, %v579_v60  ;;  %v881_v14 = vpop.f32.mrb[5].mxu0 }
 0x170   : > { %v1450_v15 = vadd.f32 %v1449_v6, %v687_v10  ;;  %v885_v16 = vmul.f32 %v881_v14, %v583_v61  ;;  %v1248_v14 = vpop.permute.xlu1 %1247 }
 0x171   : > { %v1446_v17 = vadd.f32 %v1445_v12, %v884_v13 }
 0x172   : > { %v1451_v18 = vadd.f32 %v1450_v15, %v885_v16 }
 0x174   : > { %v979_v19 = vpop.f32.mrb[6].mxu0 }
 0x175   : > { %v984_v20 = vmul.f32 %v979_v19, %v370_v58  ;;  %v981_v21 = vpop.f32.mrb[7].mxu0 }
 0x176   : > { %v985_v22 = vmul.f32 %v981_v21, %v374_v59  ;;  %v1256_v21 = vpop.permute.xlu1 %1255 }
 0x177   : > { %v1447_v23 = vadd.f32 %v1446_v17, %v984_v20 }
 0x178   : > { %v1452_v24 = vadd.f32 %v1451_v18, %v985_v22 }
 0x179   : > { %v1079_v25 = vpop.f32.mrb[0].mxu1 }
 0x17a   : > { %v1448_v26 = vadd.f32 %v1447_v23, %v1079_v25  ;;  %v1177_v27 = vpop.f32.mrb[8].mxu0  ;;  %v1081_v28 = vpop.f32.mrb[1].mxu1 }
 0x17b   : > { %v1182_v29 = vmul.f32 %v1177_v27, %v579_v60  ;;  %v1453_v30 = vadd.f32 %v1452_v24, %v1081_v28  ;;  %v1179_v31 = vpop.f32.mrb[9].mxu0  ;;  %v1266_v28 = vpop.permute.xlu0 %1265 }
 0x17c   : > { %v1183_v32 = vmul.f32 %v1179_v31, %v583_v61 }
 0x17d   : > { %v1184_v33 = vadd.f32 %v1448_v26, %v1182_v29 }
 0x17e   : > { %v1185_v34 = vadd.f32 %v1453_v30, %v1183_v32 }
 0x17f   : > { %v1192_v36 = vadd.f32 %v1190_v35, %v1184_v33 }
 0x180   : > { %v1193_v37 = vadd.f32 %v1190_v35, %v1185_v34  ;;  %v1281_v35 = vpop.permute.xlu1 %1280 }
 0x181   : > { %v1194_v38 = vmul.f32 %v1192_v36, %v1192_v36 }
 0x182   : > { %v1195_v39 = vmul.f32 %v1193_v37, %v1193_v37 }
 0x183   : > { %v1196_v40 = vrot.slane %v1194_v38, 4 }
 0x184   : > { %v1202_v41 = vrot.slane %v1195_v39, 4 }
 0x185   : > { %v1197_v42 = vadd.f32 %v1196_v40, %v1194_v38 }
 0x186   : > { %v1203_v43 = vadd.f32 %v1202_v41, %v1195_v39 }
 0x187   : > { %v1198_v44 = vrot.slane %v1197_v42, 2 }
 0x188   : > { %v1204_v45 = vrot.slane %v1203_v43, 2 }
 0x189   : > { %v1199_v46 = vadd.f32 %v1198_v44, %v1197_v42 }
 0x18a   : > { %v1205_v47 = vadd.f32 %v1204_v45, %v1203_v43 }
 0x18b   : > { %v1200_v48 = vrot.slane %v1199_v46, 1 }
 0x18c   : > { %v1206_v49 = vrot.slane %v1205_v47, 1 }
 0x18d   : > { %v1201_v50 = vadd.f32 %v1200_v48, %v1199_v46 }
 0x18e   : > { %v1207_v0 = vadd.f32 %v1206_v49, %v1205_v47  ;;  %v1301_v47 = vpop.permute.xlu1 %1300 }
 0x18f   : > { %v1208_v51 = vmax.f32 %v1201_v50, 1e-12 }
 0x190   : > { %v1209_v52 = vmax.f32 %v1207_v0, 1e-12 }
 0x191   : > { %1519 = vrsqrt.f32 %v1208_v51 }
 0x192   : > { %1521 = vrsqrt.f32 %v1209_v52 }
 0x19b   : > { %v1520_v53 = vpop.eup %1519 }
 0x19c   : > { %v1522_v54 = vpop.eup %1521  ;;  %v1212_v55 = vmul.f32 %v1520_v53, %v1208_v51 }
 0x19d   : > { %v1213_v56 = vmul.f32 %v1522_v54, %v1209_v52 }
 0x19e   : > { %v1214_v57 = vmul.f32 0.031622775, %v1212_v55 }
 0x19f   : > { %v1215_v58 = vmul.f32 0.031622775, %v1213_v56 }
 0x1a0   : > { %v1216_v59 = vmin.f32 %v1214_v57, 0.99999 }
 0x1a1   : > { %v1217_v60 = vmin.f32 %v1215_v58, 0.99999 }
 0x1a2   : > { %v1218_v61 = vadd.f32 1.0, %v1216_v59  ;;  %v1224_v62 = vsub.f32 1.0, %v1216_v59 }
 0x1a3   : > { %v1219_v63 = vadd.f32 1.0, %v1217_v60  ;;  %v1225_v1 = vsub.f32 1.0, %v1217_v60 }
 0x1a4   : > { %1523 = vlog2.f32 %v1218_v61 }
 0x1a5   : > { %1525 = vlog2.f32 %v1219_v63 }
 0x1a6   : > { %1527 = vlog2.f32 %v1224_v62 }
 0x1a7   : > { %1529 = vlog2.f32 %v1225_v1 }
 0x1ae   : > { %v1524_v2 = vpop.eup %1523 }
 0x1af   : > { %v1526_v3 = vpop.eup %1525  ;;  %v1221_v4 = vmul.f32 0.6931472, %v1524_v2 }
 0x1b0   : > { %v1528_v5 = vpop.eup %1527  ;;  %v1223_v6 = vmul.f32 0.6931472, %v1526_v3 }
 0x1b1   : > { %v1530_v7 = vpop.eup %1529  ;;  %v1227_v8 = vmul.f32 0.6931472, %v1528_v5 }
 0x1b2   : > { %v1229_v9 = vmul.f32 0.6931472, %v1530_v7 }
 0x1b3   : > { %v1230_v10 = vsub.f32 %v1221_v4, %v1227_v8 }
 0x1b4   : > { %v1231_v11 = vsub.f32 %v1223_v6, %v1229_v9 }
 0x1b5   : > { %v1232_v12 = vmul.f32 0.5, %v1230_v10 }
 0x1b6   : > { %v1233_v13 = vmul.f32 0.5, %v1231_v11 }
 0x1b7   : > { %v1234_v15 = vmul.f32 %v1520_v53, %v1232_v12 }
 0x1b8   : > { %v1235_v16 = vmul.f32 %v1522_v54, %v1233_v13 }
 0x1b9   : > { %v1236_v17 = vmul.f32 31.622776, %v1234_v15 }
 0x1ba   : > { %v1237_v18 = vmul.f32 31.622776, %v1235_v16 }
 0x1bb   : > { %v1238_v19 = vmul.f32 %v1236_v17, %v1192_v36 }
 0x1bc   : > { %v1239_v20 = vmul.f32 %v1237_v18, %v1193_v37  ;;  %v1290_v37 = vpop.permute.xlu0 %1289 }
 0x1bd   : > { %v1242_v22 = vrot.slane %v1238_v19, 7  ;;  %v1240_v23 = vrot.slane %v1238_v19, 1  ;;  %v1250_v26 = vmul.f32 %v1248_v14, %v1238_v19 }
 0x1be   : > { %v1243_v24 = vrot.slane %v1239_v20, 7  ;;  %v1241_v25 = vrot.slane %v1239_v20, 1  ;;  %v1251_v29 = vmul.f32 %v1248_v14, %v1239_v20 }
 0x1bf   : > { %v1258_v27 = vmul.f32 %v1256_v21, %v1240_v23  ;;  %v1268_v31 = vmul.f32 %v1266_v28, %v1242_v22 }
 0x1c0   : > { %v1259_v30 = vmul.f32 %v1256_v21, %v1241_v25  ;;  %v1269_v33 = vmul.f32 %v1266_v28, %v1243_v24 }
 0x1c1   : > { %v1260_v32 = vadd.f32 %v1258_v27, %v1250_v26 }
 0x1c2   : > { %v1261_v34 = vadd.f32 %v1259_v30, %v1251_v29 }
 0x1c3   : > { %v1270_v38 = vadd.f32 %v1268_v31, %v1260_v32 }
 0x1c4   : > { %v1271_v39 = vadd.f32 %v1269_v33, %v1261_v34 }
 0x1c5   : > { %v1272_v40 = vrot.slane %v1270_v38, 2  ;;  %v1274_v36 = vrot.slane %v1270_v38, 6  ;;  %v1283_v43 = vmul.f32 %v1281_v35, %v1270_v38 }
 0x1c6   : > { %v1273_v41 = vrot.slane %v1271_v39, 2  ;;  %v1275_v42 = vrot.slane %v1271_v39, 6  ;;  %v1284_v45 = vmul.f32 %v1281_v35, %v1271_v39 }
 0x1c7   : > { %v1292_v44 = vmul.f32 %v1290_v37, %v1272_v40  ;;  %v1303_v49 = vmul.f32 %v1301_v47, %v1274_v36 }
 0x1c8   : > { %v1293_v46 = vmul.f32 %v1290_v37, %v1273_v41  ;;  %v1304_v0 = vmul.f32 %v1301_v47, %v1275_v42 }
 0x1c9   : > { %v1294_v48 = vadd.f32 %v1292_v44, %v1283_v43 }
 0x1ca   : > { %v1295_v50 = vadd.f32 %v1293_v46, %v1284_v45 }
 0x1cb   : > { %v1305_v51 = vadd.f32 %v1303_v49, %v1294_v48 }
 0x1cc   : > { %v1306_v52 = vadd.f32 %v1304_v0, %v1295_v50 }
 0x1cd   : > { %v1307_v53 = vmul.f32 %v1305_v51, %v1305_v51 }
 0x1ce   : > { %v1308_v54 = vmul.f32 %v1306_v52, %v1306_v52 }
 0x1cf   : > { %v1309_v55 = vrot.slane %v1307_v53, 4 }
 0x1d0   : > { %v1315_v56 = vrot.slane %v1308_v54, 4 }
 0x1d1   : > { %v1310_v57 = vadd.f32 %v1309_v55, %v1307_v53 }
 0x1d2   : > { %v1316_v58 = vadd.f32 %v1315_v56, %v1308_v54 }
 0x1d3   : > { %v1311_v59 = vrot.slane %v1310_v57, 2 }
 0x1d4   : > { %v1317_v60 = vrot.slane %v1316_v58, 2 }
 0x1d5   : > { %v1312_v61 = vadd.f32 %v1311_v59, %v1310_v57 }
 0x1d6   : > { %v1318_v62 = vadd.f32 %v1317_v60, %v1316_v58 }
 0x1d7   : > { %v1313_v63 = vrot.slane %v1312_v61, 1 }
 0x1d8   : > { %v1319_v1 = vrot.slane %v1318_v62, 1 }
 0x1d9   : > { %v1314_v2 = vadd.f32 %v1313_v63, %v1312_v61 }
 0x1da   : > { %v1320_v3 = vadd.f32 %v1319_v1, %v1318_v62 }
 0x1db   : > { %v1321_v4 = vmax.f32 %v1314_v2, 1e-12 }
 0x1dc   : > { %v1322_v5 = vmax.f32 %v1320_v3, 1e-12 }
 0x1dd   : > { %1531 = vrsqrt.f32 %v1321_v4 }
 0x1de   : > { %1533 = vrsqrt.f32 %v1322_v5 }
 0x1e7   : > { %v1532_v6 = vpop.eup %1531 }
 0x1e8   : > { %v1534_v7 = vpop.eup %1533  ;;  %v1325_v8 = vmul.f32 %v1532_v6, %v1321_v4 }
 0x1e9   : > { %v1326_v9 = vmul.f32 %v1534_v7, %v1322_v5 }
 0x1ea   : > { %v1327_v10 = vmul.f32 0.031622775, %v1325_v8 }
 0x1eb   : > { %v1328_v11 = vmul.f32 0.031622775, %v1326_v9 }
 0x1ec   : > { %1535 = vtanh.f32 %v1327_v10 }
 0x1ed   : > { %1537 = vtanh.f32 %v1328_v11 }
 0x1f6   : > { %v1536_v12 = vpop.eup %1535 }
 0x1f7   : > { %v1538_v13 = vpop.eup %1537  ;;  %v1331_v14 = vmul.f32 %v1536_v12, %v1532_v6 }
 0x1f8   : > { %v1332_v15 = vmul.f32 %v1538_v13, %v1534_v7 }
 0x1f9   : > { %v1333_v16 = vmul.f32 31.622776, %v1331_v14 }
 0x1fa   : > { %v1334_v17 = vmul.f32 31.622776, %v1332_v15 }
 0x1fb   : > { %v1335_v18 = vmul.f32 %v1333_v16, %v1305_v51 }
 0x1fc   : > { %v1336_v19 = vmul.f32 %v1334_v17, %v1306_v52 }
 0x1fd   : > { %1337 = vst [vmem:[%s278_s27] sm:$0xff] %v1335_v18 }
 0x1fe   : > { %1338 = vst [vmem:[%s278_s27 + $0x8] sm:$0xff] %v1336_v19 }
 0x1ff PF: > { %s17_s24 = sadd.s32 1, %s1545_s24  }
 0x200   : > { %p14_p4 = scmp.ge.s32.totalorder %s17_s24, 4  }
 0x202   :  { %16 = sbr.rel (!%p14_p4) target bundleno = 1 (0x1), region = 90 }

</bundles_post_ra>
